<compile_context>
chip_gen: v6e
topology: v6e:2x2x1
jax: 0.10.0
libtpu: 0.0.40
codegen_flags: <defaults>
</compile_context>

<pallas_src>
import math
import functools

import jax
import jax.numpy as jnp
from jax.experimental import pallas as pl
from jax.experimental.pallas import tpu as pltpu

D_MODEL = 32
NUM_HEADS = 4
D_K = D_MODEL // NUM_HEADS


def mha_kernel(x_ref, wqkv_ref, bqkv_ref, wo_ref, bo_ref, out_ref, *,
               num_heads, d_k):
    """One grid step = one batch element.

    x_ref    : (1, S, D)       this batch element's rows
    wqkv_ref : (D, 3*H*d_k)    packed [Wq*scale | Wk | Wv] columns, head-major
                               inside each block (column group g = block*H + h)
    bqkv_ref : (1, 3*H*d_k)    matching packed bias
    wo_ref   : (H, d_k, D)     W_o^T split per head (NOT replicated per batch)
    bo_ref   : (1, D)
    out_ref  : (1, S, D)
    """
    H, dk = num_heads, d_k
    S = x_ref.shape[1]

    x = x_ref[0]                                                   # (S, D)

    # ---- fused Q/K/V projection: ONE wide MXU matmul (S,32)@(32,96) ----
    qkv = jnp.dot(x, wqkv_ref[...], preferred_element_type=jnp.float32)
    qkv = qkv + bqkv_ref[...]                                      # (S, 3*H*dk)

    # ---- head split: static 8-lane slices stacked into the leading dim ----
    # (leading-dim stack keeps the attention core as batched einsums; the
    #  lane slices are the only relayout cost of the wide projection.)
    def heads(block):  # block: 0 = Q, 1 = K, 2 = V
        return jnp.stack(
            [qkv[:, (block * H + h) * dk:(block * H + h + 1) * dk]
             for h in range(H)],
            axis=0)                                                # (H, S, dk)

    q, k, v = heads(0), heads(1), heads(2)   # scale already folded into Wq/bq

    # ---- scores + numerically-stable softmax (exact normalization) ----
    s = jnp.einsum("hqd,hkd->hqk", q, k,
                   preferred_element_type=jnp.float32)             # (H, S, S)
    m = jnp.max(s, axis=-1, keepdims=True)
    p = jnp.exp(s - m)
    attn = p / jnp.sum(p, axis=-1, keepdims=True)

    o = jnp.einsum("hqk,hkd->hqd", attn, v,
                   preferred_element_type=jnp.float32)             # (H, S, dk)

    # ---- output projection with the head-concat folded in ----
    #   y[s, :] = sum_h o[h, s, :] @ Wo^T[h*dk:(h+1)*dk, :] + bo
    contrib = jnp.einsum("hqd,hdn->hqn", o, wo_ref[...],
                         preferred_element_type=jnp.float32)       # (H, S, D)
    y = jnp.sum(contrib, axis=0) + bo_ref[...]                     # (S, D)
    out_ref[0] = y.astype(out_ref.dtype)


def prepare_params(params):
    """One-time packing of the four nn.Linear weights (batch-size independent).

    torch nn.Linear computes y = x @ W.T + b with W of shape (D_out, D_in).
    """
    H, dk, D = NUM_HEADS, D_K, D_MODEL
    scale = 1.0 / math.sqrt(dk)

    # Columns: [ Wq.T*scale | Wk.T | Wv.T ]  ->  column group g = block*H + h
    # is head h of {Q, K, V}, matching the kernel's `heads(block)` slicing.
    w_qkv = jnp.concatenate(
        [params["wq"].T * scale, params["wk"].T, params["wv"].T], axis=1)   # (D, 3D)
    b_qkv = jnp.concatenate(
        [params["bq"] * scale, params["bk"], params["bv"]]).reshape(1, 3 * D)

    w_o = params["wo"].T.reshape(H, dk, D)    # head-sliced W_o^T, (H, dk, D)
    b_o = params["bo"].reshape(1, D)
    # TODO(synk): for v6e+/v7x, cast w_qkv/b_qkv/w_o (and x in the wrapper) to
    # bfloat16 for bf16-native MXU passes; kept f32 here to preserve the f32
    # reference tolerance.
    return {"w_qkv": w_qkv, "b_qkv": b_qkv, "w_o": w_o, "b_o": b_o}


def multi_head_attention(x, prep):
    """x: (B, S, D) float32.  prep: output of prepare_params(params)."""
    B, S, D = x.shape
    assert D == D_MODEL
    H, dk = NUM_HEADS, D_K

    kernel = functools.partial(mha_kernel, num_heads=H, d_k=dk)

    # Advisory cost estimate (kernel is launch/latency bound at these sizes).
    flops = B * (2 * S * D * (3 * D)            # fused QKV projection
                 + 2 * H * (2 * S * S * dk)     # QK^T and attn @ V
                 + H * (2 * S * dk * D))        # output projection
    transcendentals = B * H * S * S             # exp in softmax
    bytes_accessed = 4 * (2 * x.size + prep["w_qkv"].size + prep["b_qkv"].size
                          + prep["w_o"].size + prep["b_o"].size)

    out = pl.pallas_call(
        kernel,
        out_shape=jax.ShapeDtypeStruct((B, S, D), x.dtype),
        grid_spec=pltpu.PrefetchScalarGridSpec(
            num_scalar_prefetch=0,
            grid=(B,),                                     # one step per batch elem
            in_specs=[
                pl.BlockSpec((1, S, D), lambda b: (b, 0, 0)),       # x[b]
                pl.BlockSpec((D, 3 * D), lambda b: (0, 0)),         # W_qkv (resident)
                pl.BlockSpec((1, 3 * D), lambda b: (0, 0)),         # b_qkv (resident)
                pl.BlockSpec((H, dk, D), lambda b: (0, 0, 0)),      # W_o   (resident)
                pl.BlockSpec((1, D), lambda b: (0, 0)),             # b_o   (resident)
            ],
            out_specs=pl.BlockSpec((1, S, D), lambda b: (b, 0, 0)),
        ),
        # Parallel batch axis: both TCs get work on v7x; x/out DMA of step b+1
        # pipelines behind compute of step b on all generations.
        compiler_params=pltpu.CompilerParams(
            dimension_semantics=("parallel",),
            vmem_limit_bytes=32 * 1024 * 1024),
        cost_estimate=pl.CostEstimate(flops=flops,
                                      transcendentals=transcendentals,
                                      bytes_accessed=bytes_accessed),
    )(x, prep["w_qkv"], prep["b_qkv"], prep["w_o"], prep["b_o"])
    return out


def mha_reference(x, params):
    """Pure-JAX reference mirroring the PyTorch forward, for verification."""
    B, S, D = x.shape

    def linear(v, W, b):
        return v @ W.T + b

    q = linear(x, params["wq"], params["bq"])
    k = linear(x, params["wk"], params["bk"])
    v = linear(x, params["wv"], params["bv"])

    def split(t):
        return t.reshape(B, S, NUM_HEADS, D_K).transpose(0, 2, 1, 3)  # (B,H,S,dk)

    q, k, v = split(q), split(k), split(v)
    energy = jnp.einsum("bhqd,bhkd->bhqk", q, k) / math.sqrt(D_K)
    attn = jax.nn.softmax(energy, axis=-1)
    out = jnp.einsum("bhqk,bhkd->bhqd", attn, v)
    out = out.transpose(0, 2, 1, 3).reshape(B, S, D)
    return linear(out, params["wo"], params["bo"])


def init_params(key):
    """Deterministic nn.Linear-style init: U(-1/sqrt(fan_in), 1/sqrt(fan_in))."""
    keys = jax.random.split(key, 8)
    bound = 1.0 / math.sqrt(D_MODEL)

    def u(k, shape):
        return jax.random.uniform(k, shape, jnp.float32, -bound, bound)

    return {
        "wq": u(keys[0], (D_MODEL, D_MODEL)), "bq": u(keys[1], (D_MODEL,)),
        "wk": u(keys[2], (D_MODEL, D_MODEL)), "bk": u(keys[3], (D_MODEL,)),
        "wv": u(keys[4], (D_MODEL, D_MODEL)), "bv": u(keys[5], (D_MODEL,)),
        "wo": u(keys[6], (D_MODEL, D_MODEL)), "bo": u(keys[7], (D_MODEL,)),
    }


if __name__ == "__main__":
    key = jax.random.PRNGKey(0)
    pkey, xkey = jax.random.split(key)
    params = init_params(pkey)

    B, S = 2, 8
    x = jax.random.normal(xkey, (B, S, D_MODEL), jnp.float32)

    prep = prepare_params(params)            # one-time, batch-size independent
    out = multi_head_attention(x, prep)
    out = jax.block_until_ready(out)

    ref = mha_reference(x, params)
    assert out.shape == (B, S, D_MODEL)
    # f32 throughout + exact softmax normalization -> tight tolerance.
    assert jnp.allclose(out, ref, atol=1e-4, rtol=1e-4), "mismatch vs reference"

    print("KERNEL_OK")
</pallas_src>

<mosaic_0001>
module attributes {stable_mosaic.version = 11 : i64} {
  func.func @mha_kernel(%arg0: i32, %arg1: memref<1x8x32xf32, #tpu.memory_space<vmem>>, %arg2: memref<32x96xf32, #tpu.memory_space<vmem>>, %arg3: memref<1x96xf32, #tpu.memory_space<vmem>>, %arg4: memref<4x8x32xf32, #tpu.memory_space<vmem>>, %arg5: memref<1x32xf32, #tpu.memory_space<vmem>>, %arg6: memref<1x8x32xf32, #tpu.memory_space<vmem>>) attributes {dimension_semantics = [#tpu.dimension_semantics<parallel>], iteration_bounds = array<i64: 2>, scalar_prefetch = 0 : i64, scratch_operands = 0 : i64, tpu.core_type = #tpu.core_type<tc>, window_params = [{transform_indices = @transform_0, window_bounds = array<i64: 1, 8, 32>}, {pipeline_mode = #tpu.pipeline_mode<synchronous>, transform_indices = @transform_1, window_bounds = array<i64: 32, 96>}, {pipeline_mode = #tpu.pipeline_mode<synchronous>, transform_indices = @transform_2, window_bounds = array<i64: 1, 96>}, {pipeline_mode = #tpu.pipeline_mode<synchronous>, transform_indices = @transform_3, window_bounds = array<i64: 4, 8, 32>}, {pipeline_mode = #tpu.pipeline_mode<synchronous>, transform_indices = @transform_4, window_bounds = array<i64: 1, 32>}, {transform_indices = @transform_5, window_bounds = array<i64: 1, 8, 32>}]} {
    %c0 = arith.constant 0 : index
    %c0_0 = arith.constant 0 : index
    %c0_1 = arith.constant 0 : index
    %0 = vector.load %arg1[%c0, %c0_0, %c0_1] : memref<1x8x32xf32, #tpu.memory_space<vmem>>, vector<1x8x32xf32>
    %1 = vector.shape_cast %0 : vector<1x8x32xf32> to vector<8x32xf32>
    %c0_2 = arith.constant 0 : index
    %c0_3 = arith.constant 0 : index
    %2 = vector.load %arg2[%c0_2, %c0_3] : memref<32x96xf32, #tpu.memory_space<vmem>>, vector<32x96xf32>
    %cst = arith.constant dense<0.000000e+00> : vector<8x96xf32>
    %3 = tpu.matmul %1, %2, %cst {dimension_numbers = #tpu.dot_dimension_numbers<[1], [0], [0], [1], [0, 0, 1, 1], [], []>} : vector<8x32xf32>, vector<32x96xf32>, vector<8x96xf32> -> vector<8x96xf32>
    %c0_4 = arith.constant 0 : index
    %c0_5 = arith.constant 0 : index
    %4 = vector.load %arg3[%c0_4, %c0_5] : memref<1x96xf32, #tpu.memory_space<vmem>>, vector<1x96xf32>
    %5 = vector.broadcast %4 : vector<1x96xf32> to vector<8x96xf32>
    %6 = arith.addf %3, %5 : vector<8x96xf32>
    %7 = vector.extract_strided_slice %6 {offsets = [0, 0], sizes = [8, 8], strides = [1, 1]} : vector<8x96xf32> to vector<8x8xf32>
    %8 = vector.extract_strided_slice %6 {offsets = [0, 8], sizes = [8, 8], strides = [1, 1]} : vector<8x96xf32> to vector<8x8xf32>
    %9 = vector.extract_strided_slice %6 {offsets = [0, 16], sizes = [8, 8], strides = [1, 1]} : vector<8x96xf32> to vector<8x8xf32>
    %10 = vector.extract_strided_slice %6 {offsets = [0, 24], sizes = [8, 8], strides = [1, 1]} : vector<8x96xf32> to vector<8x8xf32>
    %11 = vector.shape_cast %7 : vector<8x8xf32> to vector<1x8x8xf32>
    %12 = vector.shape_cast %8 : vector<8x8xf32> to vector<1x8x8xf32>
    %13 = vector.shape_cast %9 : vector<8x8xf32> to vector<1x8x8xf32>
    %14 = vector.shape_cast %10 : vector<8x8xf32> to vector<1x8x8xf32>
    %15 = tpu.concatenate %11, %12, %13, %14 in 0 : vector<1x8x8xf32>, vector<1x8x8xf32>, vector<1x8x8xf32>, vector<1x8x8xf32> -> vector<4x8x8xf32>
    %16 = vector.extract_strided_slice %6 {offsets = [0, 32], sizes = [8, 8], strides = [1, 1]} : vector<8x96xf32> to vector<8x8xf32>
    %17 = vector.extract_strided_slice %6 {offsets = [0, 40], sizes = [8, 8], strides = [1, 1]} : vector<8x96xf32> to vector<8x8xf32>
    %18 = vector.extract_strided_slice %6 {offsets = [0, 48], sizes = [8, 8], strides = [1, 1]} : vector<8x96xf32> to vector<8x8xf32>
    %19 = vector.extract_strided_slice %6 {offsets = [0, 56], sizes = [8, 8], strides = [1, 1]} : vector<8x96xf32> to vector<8x8xf32>
    %20 = vector.shape_cast %16 : vector<8x8xf32> to vector<1x8x8xf32>
    %21 = vector.shape_cast %17 : vector<8x8xf32> to vector<1x8x8xf32>
    %22 = vector.shape_cast %18 : vector<8x8xf32> to vector<1x8x8xf32>
    %23 = vector.shape_cast %19 : vector<8x8xf32> to vector<1x8x8xf32>
    %24 = tpu.concatenate %20, %21, %22, %23 in 0 : vector<1x8x8xf32>, vector<1x8x8xf32>, vector<1x8x8xf32>, vector<1x8x8xf32> -> vector<4x8x8xf32>
    %25 = vector.extract_strided_slice %6 {offsets = [0, 64], sizes = [8, 8], strides = [1, 1]} : vector<8x96xf32> to vector<8x8xf32>
    %26 = vector.extract_strided_slice %6 {offsets = [0, 72], sizes = [8, 8], strides = [1, 1]} : vector<8x96xf32> to vector<8x8xf32>
    %27 = vector.extract_strided_slice %6 {offsets = [0, 80], sizes = [8, 8], strides = [1, 1]} : vector<8x96xf32> to vector<8x8xf32>
    %28 = vector.extract_strided_slice %6 {offsets = [0, 88], sizes = [8, 8], strides = [1, 1]} : vector<8x96xf32> to vector<8x8xf32>
    %29 = vector.shape_cast %25 : vector<8x8xf32> to vector<1x8x8xf32>
    %30 = vector.shape_cast %26 : vector<8x8xf32> to vector<1x8x8xf32>
    %31 = vector.shape_cast %27 : vector<8x8xf32> to vector<1x8x8xf32>
    %32 = vector.shape_cast %28 : vector<8x8xf32> to vector<1x8x8xf32>
    %33 = tpu.concatenate %29, %30, %31, %32 in 0 : vector<1x8x8xf32>, vector<1x8x8xf32>, vector<1x8x8xf32>, vector<1x8x8xf32> -> vector<4x8x8xf32>
    "tpu.trace_start"() <{level = 10 : i32, message = "hqd,hkd->hqk"}> : () -> ()
    %cst_6 = arith.constant dense<0.000000e+00> : vector<4x8x8xf32>
    %34 = tpu.matmul %15, %24, %cst_6 {dimension_numbers = #tpu.dot_dimension_numbers<[2], [2], [1], [1], [0, 0, 0, 1, 1, 1], [0], [0]>} : vector<4x8x8xf32>, vector<4x8x8xf32>, vector<4x8x8xf32> -> vector<4x8x8xf32>
    "tpu.trace_stop"() : () -> ()
    %cst_7 = arith.constant dense<0xFF800000> : vector<4x8xf32>
    %35 = vector.multi_reduction <maximumf>, %34, %cst_7 [2] : vector<4x8x8xf32> to vector<4x8xf32>
    %36 = vector.shape_cast %35 : vector<4x8xf32> to vector<4x8x1xf32>
    %37 = vector.broadcast %36 : vector<4x8x1xf32> to vector<4x8x8xf32>
    %38 = arith.subf %34, %37 : vector<4x8x8xf32>
    %39 = math.exp %38 : vector<4x8x8xf32>
    %cst_8 = arith.constant dense<0.000000e+00> : vector<4x8xf32>
    %40 = vector.multi_reduction <add>, %39, %cst_8 [2] : vector<4x8x8xf32> to vector<4x8xf32>
    %41 = vector.shape_cast %40 : vector<4x8xf32> to vector<4x8x1xf32>
    %42 = vector.broadcast %41 : vector<4x8x1xf32> to vector<4x8x8xf32>
    %43 = arith.divf %39, %42 : vector<4x8x8xf32>
    "tpu.trace_start"() <{level = 10 : i32, message = "hqk,hkd->hqd"}> : () -> ()
    %cst_9 = arith.constant dense<0.000000e+00> : vector<4x8x8xf32>
    %44 = tpu.matmul %43, %33, %cst_9 {dimension_numbers = #tpu.dot_dimension_numbers<[2], [1], [1], [2], [0, 0, 0, 1, 1, 2], [0], [0]>} : vector<4x8x8xf32>, vector<4x8x8xf32>, vector<4x8x8xf32> -> vector<4x8x8xf32>
    "tpu.trace_stop"() : () -> ()
    %c0_10 = arith.constant 0 : index
    %c0_11 = arith.constant 0 : index
    %c0_12 = arith.constant 0 : index
    %45 = vector.load %arg4[%c0_10, %c0_11, %c0_12] : memref<4x8x32xf32, #tpu.memory_space<vmem>>, vector<4x8x32xf32>
    "tpu.trace_start"() <{level = 10 : i32, message = "hqd,hdn->hqn"}> : () -> ()
    %cst_13 = arith.constant dense<0.000000e+00> : vector<4x8x32xf32>
    %46 = tpu.matmul %44, %45, %cst_13 {dimension_numbers = #tpu.dot_dimension_numbers<[2], [1], [1], [2], [0, 0, 0, 1, 1, 2], [0], [0]>} : vector<4x8x8xf32>, vector<4x8x32xf32>, vector<4x8x32xf32> -> vector<4x8x32xf32>
    "tpu.trace_stop"() : () -> ()
    %cst_14 = arith.constant dense<0.000000e+00> : vector<8x32xf32>
    %47 = vector.multi_reduction <add>, %46, %cst_14 [0] : vector<4x8x32xf32> to vector<8x32xf32>
    %c0_15 = arith.constant 0 : index
    %c0_16 = arith.constant 0 : index
    %48 = vector.load %arg5[%c0_15, %c0_16] : memref<1x32xf32, #tpu.memory_space<vmem>>, vector<1x32xf32>
    %49 = vector.broadcast %48 : vector<1x32xf32> to vector<8x32xf32>
    %50 = arith.addf %47, %49 : vector<8x32xf32>
    %c0_17 = arith.constant 0 : index
    %c0_18 = arith.constant 0 : index
    %c0_19 = arith.constant 0 : index
    %51 = vector.load %arg6[%c0_17, %c0_18, %c0_19] : memref<1x8x32xf32, #tpu.memory_space<vmem>>, vector<1x8x32xf32>
    %52 = vector.shape_cast %51 : vector<1x8x32xf32> to vector<8x32xf32>
    %53 = vector.shape_cast %50 : vector<8x32xf32> to vector<1x8x32xf32>
    tpu.vector_store %arg6[%c0_17, %c0_18, %c0_19], %53 {strides = array<i32>} : memref<1x8x32xf32, #tpu.memory_space<vmem>>, vector<1x8x32xf32>,
    return
  }
  func.func @transform_0(%arg0: i32) -> (i32, i32, i32) {
    %c0_i32 = arith.constant 0 : i32
    %c0_i32_0 = arith.constant 0 : i32
    %c0_i32_1 = arith.constant 0 : i32
    return %arg0, %c0_i32, %c0_i32_0 : i32, i32, i32
  }
  func.func @transform_1(%arg0: i32) -> (i32, i32) {
    %c0_i32 = arith.constant 0 : i32
    %c0_i32_0 = arith.constant 0 : i32
    %c0_i32_1 = arith.constant 0 : i32
    return %c0_i32, %c0_i32_0 : i32, i32
  }
  func.func @transform_2(%arg0: i32) -> (i32, i32) {
    %c0_i32 = arith.constant 0 : i32
    %c0_i32_0 = arith.constant 0 : i32
    %c0_i32_1 = arith.constant 0 : i32
    return %c0_i32, %c0_i32_0 : i32, i32
  }
  func.func @transform_3(%arg0: i32) -> (i32, i32, i32) {
    %c0_i32 = arith.constant 0 : i32
    %c0_i32_0 = arith.constant 0 : i32
    %c0_i32_1 = arith.constant 0 : i32
    %c0_i32_2 = arith.constant 0 : i32
    return %c0_i32, %c0_i32_0, %c0_i32_1 : i32, i32, i32
  }
  func.func @transform_4(%arg0: i32) -> (i32, i32) {
    %c0_i32 = arith.constant 0 : i32
    %c0_i32_0 = arith.constant 0 : i32
    %c0_i32_1 = arith.constant 0 : i32
    return %c0_i32, %c0_i32_0 : i32, i32
  }
  func.func @transform_5(%arg0: i32) -> (i32, i32, i32) {
    %c0_i32 = arith.constant 0 : i32
    %c0_i32_0 = arith.constant 0 : i32
    %c0_i32_1 = arith.constant 0 : i32
    return %arg0, %c0_i32, %c0_i32_0 : i32, i32, i32
  }
}

</mosaic_0001>

<bundles_post_ra>
// kernel: tpu_custom_call.1
= control target key start
LH: loop header
LB: loop body
LE: loop exit
PB: predicated region body
PF: predicated region fallthrough
CT: control target
= control target key end

     0   :  { %10 = vsyncpa [#allocation3], 0  ;;  %s2111_s0 = inlined_call_operand.hbm [shape: f32[2,8,32], index: 0, kind: input, shape index: {}]   ;;  %s2112_s1 = inlined_call_operand.hbm [shape: f32[32,96], index: 1, kind: input, shape index: {}]   ;;  %s2113_s2 = inlined_call_operand.vmem [shape: f32[1,96], index: 2, kind: input, shape index: {}]   ;;  %s2114_s3 = inlined_call_operand.hbm [shape: f32[4,8,32], index: 3, kind: input, shape index: {}]   ;;  %s2115_s4 = inlined_call_operand.vmem [shape: f32[1,32], index: 4, kind: input, shape index: {}]   ;;  %s2116_s5 = inlined_call_operand.hbm [shape: f32[2,8,32], index: 5, kind: output, shape index: {}]  }
   0x1   :  { %12 = vsyncpa [#allocation3 + $0x1], 0 }
   0x2   :  { %13 = vsyncpa [#allocation6], 0 }
   0x3   :  { %14 = vsyncpa [#allocation4], 0 }
   0x4   :  { %16 = vsyncpa [#allocation4 + $0x1], 0  ;;  %s1850_s18 = smov 0   ;;  %s1852_s19 = smov 0  }
   0x5   :  { %s1854_s20 = smov 0   ;;  %s1856_s21 = smov 0  }
   0x6 LB: > { %s1871_s22 = sadd.s32 4294967295, %s1805_s21   ;;  %s1430_s23 = sadd.s32 4294967294, %s1805_s21   ;;  %s1805_s21 = sphi %s1856_s21, %s2138_s21   ;;  %s1801_s20 = sphi %s1854_s20, %s2137_s20   ;;  %s1797_s19 = sphi %s1852_s19, %s2136_s19   ;;  %s1793_s18 = sphi %s1850_s18, %s2135_s18  }
   0x7   : > { %p42_p0 = scmp.ne.s32.totalorder %s1797_s19, %s1793_s18  ;;  %p2117_p1 = scmp.eq.s32.totalorder %s1871_s22, 0 }
   0x8   : > { %p156_p3 = scmp.eq.s32.totalorder %s1430_s23, 1  ;;  %p1431_p5 = scmp.ge.s32.totalorder %s1805_s21, 1 }
   0x9   : > { %p1880_p4 = por %p2117_p1, %p42_p0  ;;  %p163_p7 = scmp.lt.s32.totalorder %s1805_s21, 3 }
   0xa   : > { %p1885_p6 = por %p156_p3, %p42_p0  ;;  %s1807_s27 = smov [#allocation5]  }
   0xb   : > { %s2121_s24 = scalar_select %p1880_p4, 1, 0 }
   0xc   : > { %s2122_s25 = scalar_select %p1885_p6, 1, 0 }
   0xd   : > { %p1890_p8 = pnand %p1431_p5, %p163_p7  ;;  %s175_s28 = sshll.u32 %s1807_s27, 4  ;;  %s176_s28 = int_to_ptr.vmem [resolvable:$true] %s175_s28 }
   0xe   : > { %s1808_s30 = smov [#allocation7]   ;;  %s1668_s7 = scalar_lea.vmem %s176_s28, 512 }
   0xf   : > { %s2123_s26 = scalar_select %p1890_p8, 1, 0 }
  0x10   : > { %p1577_p9 = pneg %p1890_p8  ;;  %s191_s6 = sshll.u32 %s1808_s30, 4  ;;  %s192_s6 = int_to_ptr.vmem [resolvable:$true] %s191_s6 }
  0x11   : > { %p1669_p13 = scmp.ne.s32.totalorder %s176_s28, %s1668_s7  ;;  %p1676_p5 = scmp.lt.s32.totalorder %s176_s28, %s176_s28 }
  0x12   : > { %p1899_p11 = pnand %p1577_p9, %p2117_p1  ;;  %p1677_p7 = scmp.lt.s32.totalorder %s1668_s7, %s1668_s7 }
  0x14   : > { %p1659_p12 = pneg %p1899_p11  ;;  %p1678_p10 = por %p1677_p7, %p1676_p5 }
  0x16   : > { %p1671_p0 = pnand %p1669_p13, %p1659_p12 }
  0x18   : > { %p1672_p3 = pneg %p1671_p0 }
  0x1a   : > { %p1679_p9 = pnand %p1678_p10, %p1672_p3 }
  0x1c   : > { %1682 = shalt.err (!%p1679_p9)
}
  0x1d   : > { %s1809_s8 = smov 128   ;;  %s1810_s9 = smov 8  }
  0x1e   : > { %1580 = dma.hbm_to_vmem [thread:$0]  (!%p1899_p11), %s2112_s1, 512, %s176_s28, [#allocation6], %s1809_s8, %s1809_s8, %s1810_s9  }
  0x1f   : > { %s1694_s12 = scalar_lea.vmem %s192_s6, 512  ;;  %p1702_p2 = scmp.lt.s32.totalorder %s192_s6, %s192_s6 }
  0x20   : > { %p1695_p1 = scmp.ne.s32.totalorder %s192_s6, %s1694_s12  ;;  %p1703_p6 = scmp.lt.s32.totalorder %s1694_s12, %s1694_s12 }
  0x22   : > { %p1697_p13 = pnand %p1695_p1, %p1659_p12  ;;  %p1704_p5 = por %p1703_p6, %p1702_p2 }
  0x24   : > { %p1698_p0 = pneg %p1697_p13 }
  0x26   : > { %p1705_p10 = pnand %p1704_p5, %p1698_p0 }
  0x28   : > { %1708 = shalt.err (!%p1705_p10)
}
  0x29   : > { %1583 = dma.hbm_to_vmem [thread:$0]  (!%p1899_p11), %s2114_s3, 512, %s192_s6, [#allocation6], %s1809_s8, %s1809_s8, %s1810_s9  }
  0x2a   : > { %s1922_s15 = sadd.s32 1, %s1805_s21   ;;  %s29_s16 = sadd.s32 1, %s1801_s20 }
  0x2b   : > { %s26_s17 = ssub.s32 %s1805_s21, %s1922_s15  ;;  %p36_p1 = scmp.ne.s32.totalorder %s1801_s20, %s1797_s19 }
  0x2c   : > { %p27_p2 = scmp.eq.s32.totalorder %s26_s17, 0  ;;  %p37_p6 = scmp.eq.s32.totalorder %s1805_s21, 0 }
  0x2d   : > { %p2125_p12 = scmp.eq.s32.totalorder %s1871_s22, 1  ;;  %p1594_p7 = scmp.lt.s32.totalorder %s1805_s21, 2 }
  0x2e   : > { %s1938_s27 = scalar_select %p27_p2, %s1801_s20, %s29_s16  }
  0x2f   : > { %p1932_p3 = por %p2125_p12, %p36_p1  ;;  %p38_p9 = por %p37_p6, %p36_p1 }
  0x30   : > { %s208_s28 = sand.u32 1, %s1801_s20   ;;  %s1436_s30 = sshll.u32 %s1805_s21, 7 }
  0x31   : > { %s2126_s23 = scalar_select %p1932_p3, 1, 0 }
  0x32   : > { %s1435_s29 = sshll.u32 %s208_s28, 3  ;;  %s1945_s8 = scalar_lea.hbm %s2111_s0, %s1436_s30 }
  0x33   : > { %s212_s9 = scalar_lea.vmem [#allocation2], %s1435_s29  ;;  %p1947_p11 = pnand %p1594_p7, %p38_p9 }
  0x34   : > { %s219_s10 = sshll.u32 %s212_s9, 4  ;;  %s209_s12 = scalar_lea.sflag [#allocation3], %s208_s28  ;;  %s220_s10 = int_to_ptr.vmem [resolvable:$true] %s219_s10 }
  0x35   : > { %s1709_s13 = scalar_lea.hbm %s1945_s8, 128  ;;  %p1711_p0 = pneg %p1947_p11 }
  0x36   : > { %p1710_p13 = scmp.ne.s32.totalorder %s1945_s8, %s1709_s13  ;;  %s1714_s17 = scalar_lea.hbm %s2111_s0, 256 }
  0x37   : > { %p1715_p1 = scmp.lt.s32.totalorder %s1945_s8, %s2111_s0  ;;  %p1716_p2 = scmp.lt.s32.totalorder %s1714_s17, %s1709_s13 }
  0x38   : > { %p1712_p5 = pnand %p1711_p0, %p1710_p13 }
  0x39   : > { %p1717_p6 = por %p1716_p2, %p1715_p1 }
  0x3a   : > { %p1713_p10 = pneg %p1712_p5 }
  0x3c   : > { %p1718_p12 = pnand %p1717_p6, %p1713_p10 }
  0x3e   : > { %1721 = shalt.err (!%p1718_p12)
}
  0x3f   : > { %s1722_s6 = scalar_lea.vmem %s220_s10, 128  ;;  %s1811_s28 = smov [#allocation2]  }
  0x40   : > { %p1723_p7 = scmp.ne.s32.totalorder %s220_s10, %s1722_s6  ;;  %s1727_s7 = sshll.u32 %s1811_s28, 4  ;;  %s1728_s7 = int_to_ptr.vmem [resolvable:$false] %s1727_s7 }
  0x41   : > { %s1729_s9 = scalar_lea.vmem %s1728_s7, 256  ;;  %p1730_p13 = scmp.lt.s32.totalorder %s220_s10, %s1728_s7 }
  0x42   : > { %p1725_p9 = pnand %p1723_p7, %p1711_p0  ;;  %p1731_p5 = scmp.lt.s32.totalorder %s1729_s9, %s1722_s6 }
  0x44   : > { %p1726_p3 = pneg %p1725_p9  ;;  %p1732_p4 = por %p1731_p5, %p1730_p13 }
  0x46   : > { %p1733_p8 = pnand %p1732_p4, %p1726_p3 }
  0x48   : > { %1736 = shalt.err (!%p1733_p8)
}
  0x49   : > { %1587 = dma.hbm_to_vmem [thread:$0]  (!%p1947_p11), %s1945_s8, 128, %s220_s10, %s209_s12  }
  0x4a   : > { %p2128_p10 = scmp.ne.s32.totalorder %s2123_s26, 0 }
  0x4b   : > { %s1968_s13 = sand.u32 (!%p2128_p10), 1, %s1797_s19   ;;  %p2129_p4 = scmp.ne.s32.totalorder (!%p2128_p10), %s2121_s24, 0 }
  0x4c   : > { %228 = sbr.rel (%p2128_p10) target bundleno = 1439 (0x59f), region = 40  ;;  %s1438_s14 = sshll.u32 (!%p2128_p10), %s1968_s13, 3 }
  0x4d   : > { %s231_s16 = scalar_lea.sflag (!%p2128_p10), [#allocation3], %s1968_s13  ;;  %s234_s17 = scalar_lea.vmem (!%p2128_p10), [#allocation2], %s1438_s14 }
  0x51   : > { %1780 = dma.done.wait (%p2129_p4), %s231_s16, 128  }
  0x52   : > { %1782 = vsyncadd (%p2129_p4), %s231_s16, 4294967168  ;;  %p2130_p8 = scmp.eq.s32.totalorder %s1871_s22, 0 }
  0x54   : > { %1784 = dma.done.wait (%p2130_p8), [#allocation6], 1024   ;;  %p2131_p3 = pmov %p2130_p8 }
  0x55   : > { %v1812_v0 = vmov 0.0   ;;  %vm1813_vm0 = vmmov 0   ;;  %v273_v1 = vld [vmem:[#allocation5 + $0x18] sm:$0xff]  ;;  %v272_v2 = vld [vmem:[#allocation5 + $0x10] sm:$0xff]  ;;  %v271_v3 = vld [vmem:[#allocation5 + $0x8] sm:$0xff]  ;;  %vm281_vm1 = vcmask 261120  }
  0x56   : > { %1786 = vsyncadd (%p2131_p3), [#allocation6], 4294966272  ;;  %1494 = vmatprep.subr.mxu0 %v1812_v0  ;;  %1502 = vmatprep.mubr.msk.f32.mxu0 %vm1813_vm0, %v1812_v0  ;;  %v270_v4 = vld [vmem:[#allocation5] sm:$0xff]  ;;  %v269_v5 = vld [vmem:[%s234_s17] sm:$0xff]  ;;  %s1814_s8 = smov 104   ;;  %s1815_s10 = smov 120  }
  0x57   : > { %1505 = vmatprep.subr.mxu1 %v1812_v0  ;;  %1507 = vmatprep.mubr.msk.f32.mxu1 %vm1813_vm0, %v1812_v0  ;;  %v1442_v6 = vld [vmem:[%s2113_s2] ss:$0 sm:$0xff]  ;;  %s1816_s11 = smov 96   ;;  %s1817_s12 = smov 112   ;;  %vm364_vm2 = vcmask 64512  }
  0x58   : > { %1495 = vmatpush3.msra.mxu0 %v273_v1  ;;  %s1818_s30 = smov 64   ;;  %s1462_s28 = sshll.u32 %s1871_s22, 7 }
  0x59   : > { %1496 = vmatprep.subr.mxu0 %v1812_v0  ;;  %s268_s7 = scalar_lea.vmem [#allocation8], %s1438_s14  ;;  %s1339_s24 = scalar_lea.hbm %s2116_s5, %s1462_s28 }
  0x5a   : > { %1497 = vmatpush3.msra.mxu0 %v272_v2  ;;  %v1015_v2 = vld [vmem:[#allocation7] sm:$0xff]  ;;  %s1341_s9 = sshll.u32 %s268_s7, 4  ;;  %s1328_s26 = scalar_lea.sflag [#allocation4], %s1968_s13  ;;  %s1342_s9 = int_to_ptr.vmem [resolvable:$true] %s1341_s9 }
  0x5b   : > { %1498 = vmatprep.subr.mxu0 %v1812_v0  ;;  %p2132_p0 = scmp.ne.s32.totalorder %s2126_s23, 0 }
  0x5c   : > { %1499 = vmatpush3.msra.mxu0 %v271_v3  ;;  %v1016_v3 = vld [vmem:[#allocation7 + $0x8] sm:$0xff] }
  0x5d   : > { %1500 = vmatprep.subr.mxu0 %v1812_v0 }
  0x5e   : > { %1501 = vmatpush3.msra.mxu0 %v270_v4  ;;  %v1017_v4 = vld [vmem:[#allocation7 + $0x10] sm:$0xff] }
  0x5f   : > { %1503 = vmatmul.mubr.msk.f32.vlgmr.msra.gmra.mxu0 %vm281_vm1, %v269_v5  ;;  %1515 = vmatprep.subr.mxu0 %v1812_v0 }
  0x60   : > { %1517 = vmatprep.mubr.msk.f32.mxu0 %vm1813_vm0, %v1812_v0 }
 0x11f   : > { %v351_v7 = vpop.f32.mrf.mxu0 }
 0x120   : > { %v352_v8 = vadd.f32 %v1442_v6, %v351_v7  ;;  %v1018_v7 = vld [vmem:[#allocation7 + $0x18] sm:$0xff] }
 0x121   : > { %v1504_v9 = vpop.f32.mrf.mxu0 }
 0x122   : > { %360 = vrot.lane.b32.xlu1 %v352_v8, %s1814_s8  ;;  %356 = vrot.lane.b32.xlu0 %v352_v8, %s1815_s10  ;;  %s1737_s8 = scalar_lea.vmem %s1342_s9, 128  ;;  %s1819_s10 = smov [#allocation8]  }
 0x123   : > { %p1738_p11 = scmp.ne.s32.totalorder %s1342_s9, %s1737_s8  ;;  %s1741_s22 = sshll.u32 %s1819_s10, 4  ;;  %s1742_s22 = int_to_ptr.vmem [resolvable:$false] %s1741_s22 }
 0x124   : > { %s1743_s14 = scalar_lea.vmem %s1742_s22, 256  ;;  %p1744_p6 = scmp.lt.s32.totalorder %s1342_s9, %s1742_s22 }
 0x125   : > { %p1739_p1 = pnand %p1738_p11, %p2132_p0  ;;  %p1745_p12 = scmp.lt.s32.totalorder %s1743_s14, %s1737_s8 }
 0x126   : > { %362 = vrot.lane.b32.xlu1 %v352_v8, %s1816_s11  ;;  %358 = vrot.lane.b32.xlu0 %v352_v8, %s1817_s12 }
 0x127   : > { %p1740_p2 = pneg %p1739_p1  ;;  %p1746_p7 = por %p1745_p12, %p1744_p6 }
 0x129   : > { %p1747_p9 = pnand %p1746_p7, %p1740_p2 }
 0x194   : > { %v1998_v10 = vpop.permute.xlu1 %360  ;;  %v357_v11 = vpop.permute.xlu0 %356 }
 0x195   : > { %439 = vrot.lane.b32.xlu0 %v357_v11, %s1816_s11 }
 0x198   : > { %v363_v12 = vpop.permute.xlu1 %362  ;;  %v2000_v13 = vpop.permute.xlu0 %358 }
 0x199   : > { %1506 = vmatpush3.xpose.msk.msra.mxu1 %vm364_vm2, %v363_v12  ;;  %591 = vrot.lane.b32.xlu0 %v1998_v10, %s1816_s11 }
 0x19a   : > { %515 = vrot.lane.b32.xlu1 %v2000_v13, %s1816_s11  ;;  %1510 = vmatprep.subr.mxu1 %v1812_v0 }
 0x19c   : > { %1508 = vmatmul.mubr.msk.f32.vlgmr.msra.gmra.mxu1 %vm364_vm2, %v352_v8 }
 0x19d   : > { %1512 = vmatprep.mubr.msk.f32.mxu1 %vm1813_vm0, %v1812_v0 }
 0x207   : > { %v440_v14 = vpop.permute.xlu0 %439 }
 0x208   : > { %1511 = vmatpush3.xpose.msk.msra.mxu1 %vm364_vm2, %v440_v14 }
 0x209   : > { %1520 = vmatprep.subr.mxu1 %v1812_v0 }
 0x20b   : > { %1513 = vmatmul.mubr.msk.f32.vlgmr.msra.gmra.mxu1 %vm364_vm2, %v357_v11  ;;  %v592_v15 = vpop.permute.xlu0 %591 }
 0x20c   : > { %v516_v16 = vpop.permute.xlu1 %515  ;;  %1521 = vmatpush3.xpose.msk.msra.mxu1 %vm364_vm2, %v592_v15  ;;  %1522 = vmatprep.mubr.msk.f32.mxu1 %vm1813_vm0, %v1812_v0 }
 0x20d   : > { %1516 = vmatpush3.xpose.msk.msra.mxu0 %vm364_vm2, %v516_v16  ;;  %1530 = vmatprep.subr.mxu1 %v1812_v0 }
 0x20e   : > { %1525 = vmatprep.subr.mxu0 %v1812_v0 }
 0x20f   : > { %1523 = vmatmul.mubr.msk.f32.vlgmr.msra.gmra.mxu1 %vm364_vm2, %v1998_v10 }
 0x210   : > { %1518 = vmatmul.mubr.msk.f32.vlgmr.msra.gmra.mxu0 %vm364_vm2, %v2000_v13  ;;  %1532 = vmatprep.mubr.msk.f32.mxu1 %vm1813_vm0, %v1812_v0 }
 0x211   : > { %1527 = vmatprep.mubr.msk.f32.mxu0 %vm1813_vm0, %v1812_v0 }
 0x25c   : > { %v435_v17 = vpop.f32.mrf.mxu1 }
 0x25d   : > { %v667_v18 = vsel %vm364_vm2, %v435_v17, -inf }
 0x25e   : > { %v1509_v19 = vpop.f32.mrf.mxu1  ;;  %668 = vmax.xlane.f32.xlu1 %v667_v18 }
 0x2cb   : > { %v511_v20 = vpop.f32.mrf.mxu1 }
 0x2cc   : > { %v670_v21 = vsel %vm364_vm2, %v511_v20, -inf }
 0x2cd   : > { %671 = vmax.xlane.f32.xlu0 %v670_v21  ;;  %v1514_v22 = vpop.f32.mrf.mxu1 }
 0x2cf   : > { %v663_v23 = vpop.f32.mrf.mxu1 }
 0x2d0   : > { %v587_v24 = vpop.f32.mrf.mxu0  ;;  %v676_v25 = vsel %vm364_vm2, %v663_v23, -inf }
 0x2d1   : > { %677 = vmax.xlane.f32.xlu1 %v676_v25  ;;  %v1524_v26 = vpop.f32.mrf.mxu1  ;;  %v673_v27 = vsel %vm364_vm2, %v587_v24, -inf }
 0x2d2   : > { %674 = vmax.xlane.f32.xlu0 %v673_v27  ;;  %v1519_v28 = vpop.f32.mrf.mxu0  ;;  %v1460_v27 = vld [vmem:[%s2115_s4] ss:$0 sm:$0xff] }
 0x2e2   : > { %787 = vrot.lane.b32.xlu1 %v357_v11, %s1818_s30 }
 0x2e7   : > { %v669_v29 = vpop.xlane.xlu1 %668 }
 0x2e8   : > { %711 = vrot.lane.b32.xlu0 %v352_v8, %s1818_s30  ;;  %v679_v30 = vsub.f32 %v435_v17, %v669_v29 }
 0x2ea   : > { %v683_v31 = vmul.f32 1.442695, %v679_v30 }
 0x2ec   : > { %1641 = vpow2.f32 %v683_v31 }
 0x2f9   : > { %v1642_v32 = vpop.eup %1641 }
 0x2fa   : > { %v691_v33 = vsel %vm364_vm2, %v1642_v32, 0.0 }
 0x307   : > { %692 = vadd.xlane.f32.xlu0 %v691_v33 }
 0x356   : > { %v672_v34 = vpop.xlane.xlu0 %671 }
 0x357   : > { %v680_v35 = vsub.f32 %v511_v20, %v672_v34 }
 0x359   : > { %v685_v36 = vmul.f32 1.442695, %v680_v35 }
 0x35a   : > { %v678_v37 = vpop.xlane.xlu1 %677 }
 0x35b   : > { %1643 = vpow2.f32 %v685_v36  ;;  %v682_v38 = vsub.f32 %v663_v23, %v678_v37  ;;  %v675_v39 = vpop.xlane.xlu0 %674 }
 0x35c   : > { %v681_v40 = vsub.f32 %v587_v24, %v675_v39 }
 0x35d   : > { %v689_v41 = vmul.f32 1.442695, %v682_v38 }
 0x35e   : > { %v687_v42 = vmul.f32 1.442695, %v681_v40  ;;  %v788_v43 = vpop.permute.xlu1 %787 }
 0x35f   : > { %1645 = vpow2.f32 %v689_v41  ;;  %v712_v44 = vpop.permute.xlu0 %711  ;;  %1531 = vmatpush3.msra.mxu1 %v788_v43 }
 0x360   : > { %1647 = vpow2.f32 %v687_v42  ;;  %1526 = vmatpush3.msra.mxu0 %v712_v44  ;;  %1540 = vmatprep.subr.mxu1 %v1812_v0 }
 0x361   : > { %1535 = vmatprep.subr.mxu0 %v1812_v0 }
 0x368   : > { %v1644_v45 = vpop.eup %1643 }
 0x369   : > { %v694_v46 = vsel %vm364_vm2, %v1644_v45, 0.0 }
 0x36a   : > { %695 = vadd.xlane.f32.xlu1 %v694_v46 }
 0x36c   : > { %v1646_v47 = vpop.eup %1645 }
 0x36d   : > { %v1648_v48 = vpop.eup %1647  ;;  %v700_v49 = vsel %vm364_vm2, %v1646_v47, 0.0 }
 0x36e   : > { %701 = vadd.xlane.f32.xlu1 %v700_v49  ;;  %v697_v50 = vsel %vm364_vm2, %v1648_v48, 0.0 }
 0x36f   : > { %698 = vadd.xlane.f32.xlu0 %v697_v50 }
 0x37f   : > { %863 = vrot.lane.b32.xlu1 %v2000_v13, %s1818_s30 }
 0x385   : > { %939 = vrot.lane.b32.xlu0 %v1998_v10, %s1818_s30 }
 0x390   : > { %v693_v51 = vpop.xlane.xlu0 %692 }
 0x391   : > { %1649 = vrcp.f32 %v693_v51 }
 0x39e   : > { %v1650_v52 = vpop.eup %1649 }
 0x39f   : > { %v704_v53 = vmul.f32 %v1650_v52, %v1642_v32 }
 0x3a1   : > { %1528 = vmatmul.mubr.msk.f32.vlgmr.msra.gmra.mxu0 %vm364_vm2, %v704_v53 }
 0x3a2   : > { %1537 = vmatprep.mubr.msk.f32.mxu0 %vm1813_vm0, %v1812_v0 }
 0x3f3   : > { %v696_v54 = vpop.xlane.xlu1 %695 }
 0x3f4   : > { %1651 = vrcp.f32 %v696_v54 }
 0x3f7   : > { %v702_v55 = vpop.xlane.xlu1 %701 }
 0x3f8   : > { %1653 = vrcp.f32 %v702_v55  ;;  %v699_v56 = vpop.xlane.xlu0 %698 }
 0x3f9   : > { %1655 = vrcp.f32 %v699_v56 }
 0x3fb   : > { %v864_v57 = vpop.permute.xlu1 %863 }
 0x3fc   : > { %1536 = vmatpush3.msra.mxu0 %v864_v57  ;;  %v940_v60 = vpop.permute.xlu0 %939 }
 0x3fd   : > { %1545 = vmatprep.subr.mxu0 %v1812_v0 }
 0x401   : > { %v1652_v58 = vpop.eup %1651 }
 0x402   : > { %v706_v59 = vmul.f32 %v1652_v58, %v1644_v45 }
 0x404   : > { %1533 = vmatmul.mubr.msk.f32.vlgmr.msra.gmra.mxu1 %vm364_vm2, %v706_v59 }
 0x405   : > { %v1654_v61 = vpop.eup %1653  ;;  %1541 = vmatpush3.msra.mxu1 %v940_v60  ;;  %1542 = vmatprep.mubr.msk.f32.mxu1 %vm1813_vm0, %v1812_v0 }
 0x406   : > { %v1656_v62 = vpop.eup %1655  ;;  %v710_v63 = vmul.f32 %v1654_v61, %v1646_v47  ;;  %1550 = vmatprep.subr.mxu1 %v1812_v0 }
 0x407   : > { %v708_v1 = vmul.f32 %v1656_v62, %v1648_v48 }
 0x408   : > { %1543 = vmatmul.mubr.msk.f32.vlgmr.msra.gmra.mxu1 %vm364_vm2, %v710_v63 }
 0x409   : > { %1538 = vmatmul.mubr.msk.f32.vlgmr.msra.gmra.mxu0 %vm364_vm2, %v708_v1  ;;  %1552 = vmatprep.mubr.msk.f32.mxu1 %vm1813_vm0, %v1812_v0 }
 0x40a   : > { %1546 = vmatpush3.msra.mxu0 %v1015_v2  ;;  %1547 = vmatprep.mubr.msk.f32.mxu0 %vm1813_vm0, %v1812_v0 }
 0x40b   : > { %1555 = vmatprep.subr.mxu0 %v1812_v0  ;;  %1551 = vmatpush3.msra.mxu1 %v1016_v3 }
 0x40c   : > { %1560 = vmatprep.subr.mxu1 %v1812_v0 }
 0x461   : > { %v783_v5 = vpop.f32.mrf.mxu0 }
 0x462   : > { %1548 = vmatmul.mubr.msk.f32.vlgmr.msra.gmra.mxu0 %vm364_vm2, %v783_v5 }
 0x463   : > { %v1529_v6 = vpop.f32.mrf.mxu0  ;;  %1556 = vmatpush3.msra.mxu0 %v1017_v4  ;;  %1557 = vmatprep.mubr.msk.f32.mxu0 %vm1813_vm0, %v1812_v0 }
 0x4c4   : > { %v859_v8 = vpop.f32.mrf.mxu1 }
 0x4c5   : > { %1553 = vmatmul.mubr.msk.f32.vlgmr.msra.gmra.mxu1 %vm364_vm2, %v859_v8 }
 0x4c6   : > { %v1534_v9 = vpop.f32.mrf.mxu1  ;;  %1561 = vmatpush3.msra.mxu1 %v1018_v7  ;;  %1562 = vmatprep.mubr.msk.f32.mxu1 %vm1813_vm0, %v1812_v0 }
 0x4c8   : > { %v1011_v10 = vpop.f32.mrf.mxu1 }
 0x4c9   : > { %v935_v11 = vpop.f32.mrf.mxu0  ;;  %1563 = vmatmul.mubr.msk.f32.vlgmr.msra.gmra.mxu1 %vm364_vm2, %v1011_v10 }
 0x4ca   : > { %1558 = vmatmul.mubr.msk.f32.vlgmr.msra.gmra.mxu0 %vm364_vm2, %v935_v11  ;;  %v1544_v12 = vpop.f32.mrf.mxu1 }
 0x4cb   : > { %v1539_v13 = vpop.f32.mrf.mxu0 }
 0x522   : > { %v1088_v14 = vpop.f32.mrf.mxu0 }
 0x523   : > { %v1311_v19 = vsel %vm281_vm1, %v1088_v14, 0.0 }
 0x524   : > { %v1549_v15 = vpop.f32.mrf.mxu0 }
 0x585   : > { %v1161_v16 = vpop.f32.mrf.mxu1 }
 0x586   : > { %v1312_v17 = vsel %vm281_vm1, %v1161_v16, 0.0 }
 0x587   : > { %v1554_v18 = vpop.f32.mrf.mxu1  ;;  %v1313_v0 = vadd.f32 %v1312_v17, %v1311_v19 }
 0x589   : > { %v1307_v20 = vpop.f32.mrf.mxu1 }
 0x58a   : > { %v1234_v21 = vpop.f32.mrf.mxu0  ;;  %v1316_v26 = vsel %vm281_vm1, %v1307_v20, 0.0 }
 0x58b   : > { %v1314_v22 = vsel %vm281_vm1, %v1234_v21, 0.0  ;;  %v1564_v23 = vpop.f32.mrf.mxu1 }
 0x58c   : > { %v1315_v24 = vadd.f32 %v1314_v22, %v1313_v0  ;;  %v1559_v25 = vpop.f32.mrf.mxu0 }
 0x58e   : > { %v1317_v28 = vadd.f32 %v1316_v26, %v1315_v24 }
 0x590   : > { %v1325_v29 = vadd.f32 %v1460_v27, %v1317_v28 }
 0x592   : > { %1326 = vst.msk [vmem:[%s268_s7] sm:$0xff] %vm281_vm1, %v1325_v29 }
 0x593   : > { %1750 = shalt.err (!%p1747_p9)
}
 0x594   : > { %s1751_s11 = scalar_lea.hbm %s1339_s24, 128  ;;  %s1755_s30 = scalar_lea.hbm %s2116_s5, 256 }
 0x595   : > { %p1752_p13 = scmp.ne.s32.totalorder %s1339_s24, %s1751_s11  ;;  %p1756_p4 = scmp.lt.s32.totalorder %s1339_s24, %s2116_s5 }
 0x596   : > { %p1757_p8 = scmp.lt.s32.totalorder %s1755_s30, %s1751_s11 }
 0x597   : > { %p1753_p5 = pnand %p1752_p13, %p2132_p0 }
 0x598   : > { %p1758_p3 = por %p1757_p8, %p1756_p4 }
 0x599   : > { %p1754_p10 = pneg %p1753_p5 }
 0x59b   : > { %p1759_p11 = pnand %p1758_p3, %p1754_p10 }
 0x59d   : > { %1762 = shalt.err (!%p1759_p11)
}
 0x59e   : > { %1575 = dma.vmem_to_hbm [thread:$0]  (%p2132_p0), %s1342_s9, 128, %s1339_s24, %s1328_s26  }
 0x59f PF: > { %s1353_s28 = sand.u32 1, %s1793_s18   ;;  %p2133_p1 = scmp.ne.s32.totalorder %s2122_s25, 0 }
 0x5a0   : > { %p2134_p2 = scmp.ge.s32.totalorder %s1805_s21, 2  ;;  %s1354_s7 = scalar_lea.sflag [#allocation4], %s1353_s28 }
 0x5a2   : > { %p1589_p6 = pnand %p2134_p2, %p2133_p1 }
 0x5a4   : > { %p1590_p12 = pneg %p1589_p6 }
 0x5a6   : > { %1788 = dma.done.wait (%p1590_p12), %s1354_s7, 128  }
 0x5a7   : > { %1790 = vsyncadd (%p1590_p12), %s1354_s7, 4294967168  ;;  %p19_p7 = scmp.ge.s32.totalorder %s1922_s15, 4   ;;  %s2135_s18 = smov %s1797_s19 }
 0x5a8   : > { %s2136_s19 = smov %s1801_s20  ;;  %s2137_s20 = smov %s1938_s27 }
 0x5a9   : > { %s2138_s21 = smov %s1922_s15  ;;  %21 = sbr.rel (!%p19_p7) target bundleno = 6 (0x6), region = 93 }
 0x5ae   :  { %1359 = vsyncpa [#allocation3], 1 }
 0x5af   :  { %1361 = vsyncpa [#allocation3 + $0x1], 1 }
 0x5b0   :  { %1362 = vsyncpa [#allocation6], 1 }
 0x5b1   :  { %1363 = vsyncpa [#allocation4], 1 }
 0x5b2   :  { %1365 = vsyncpa [#allocation4 + $0x1], 1 }

</bundles_post_ra>
